<compile_context>
chip_gen: v7x
topology: tpu7x:2x2x1
jax: 0.10.0
libtpu: 0.0.40
codegen_flags: <defaults>
</compile_context>

<pallas_src>
import jax
import jax.numpy as jnp
from jax.experimental import pallas as pl
from jax.experimental.pallas import tpu as pltpu

_MAX_BLOCK_B = 512            # batch-tile cap (memory-bound sweet spot)
_PALLAS_MIN_ELEMS = 1 << 18   # below this (B*E*(A+T)), a plain XLA dot wins


def _round_up(x, m):
    return ((x + m - 1) // m) * m


def _sublane_pack(dtype):
    # Rows per packed sublane group: f32 -> 8, bf16/f16 -> 16, int8/fp8 -> 32.
    return max(8, 32 // jnp.dtype(dtype).itemsize)


def _pick_block_b(batch, pack):
    """Batch tile: multiple of the sublane pack; >=2 grid blocks when possible."""
    if batch <= pack:
        return batch                       # single tiny block (full-dim exemption)
    block_b = _round_up(pl.cdiv(batch, 2), pack)   # at least 2 blocks (v7x megacore)
    return min(block_b, _MAX_BLOCK_B)


def _vmem_limit_bytes(block_b, enc, n_a, n_t, h_dtype, w_dtype, out_dtype):
    bi = jnp.dtype(h_dtype).itemsize
    bw = jnp.dtype(w_dtype).itemsize
    bo = jnp.dtype(out_dtype).itemsize
    need = (
        2 * block_b * enc * bi            # double-buffered activation tiles
        + enc * (n_a + n_t) * bw          # resident, single-buffered weights
        + 2 * (n_a + n_t) * bw            # biases
        + 2 * block_b * (n_a + n_t) * bo  # double-buffered output tiles
    )
    need = int(need * 1.5) + (2 << 20)    # headroom for compiler scratch / layout pad
    return max(32 << 20, min(need, 64 << 20))


def _decoder_kernel(h_ref, wa_ref, ba_ref, wt_ref, bt_ref, oa_ref, ot_ref):
    # One activation load feeds both heads; MXU runs in native dtype with f32
    # accumulation (preferred_element_type); bias add + final cast in f32.
    h = h_ref[...]
    a = jnp.dot(h, wa_ref[...], preferred_element_type=jnp.float32)
    oa_ref[...] = (a + ba_ref[...].astype(jnp.float32)).astype(oa_ref.dtype)
    t = jnp.dot(h, wt_ref[...], preferred_element_type=jnp.float32)
    ot_ref[...] = (t + bt_ref[...].astype(jnp.float32)).astype(ot_ref.dtype)


def decoder_forward(h_d, wa, ba, wt, bt, *, block_b=None, use_pallas=None):
    """h_d: (B, E); wa: (E, A); ba: (A,); wt: (E, T); bt: (T,) -> ((B, A), (B, T))."""
    B, E = h_d.shape
    A = wa.shape[1]
    T = wt.shape[1]
    out_dtype = h_d.dtype

    if use_pallas is None:
        use_pallas = B * E * (A + T) >= _PALLAS_MIN_ELEMS
    if not use_pallas:
        # Tiny problem: grid/call overhead dominates, let XLA fuse a plain dot.
        a = jnp.dot(h_d, wa, preferred_element_type=jnp.float32) + ba
        t = jnp.dot(h_d, wt, preferred_element_type=jnp.float32) + bt
        return a.astype(out_dtype), t.astype(out_dtype)

    # Note: if weight dtypes differ from h_d's, the in-kernel dot promotes;
    # pin weights to the intended compute dtype at init time if that matters.
    ba2 = ba.reshape(1, A)
    bt2 = bt.reshape(1, T)

    pack = _sublane_pack(h_d.dtype)
    if block_b is None:
        block_b = _pick_block_b(B, pack)
    grid = (pl.cdiv(B, block_b),)   # ragged last block is masked by Pallas

    single_buf = pl.Buffered(1)     # constant index_map -> one resident buffer

    flops = 2 * B * E * (A + T)
    bytes_accessed = int(
        h_d.size * jnp.dtype(h_d.dtype).itemsize
        + wa.size * jnp.dtype(wa.dtype).itemsize
        + wt.size * jnp.dtype(wt.dtype).itemsize
        + ba.size * jnp.dtype(ba.dtype).itemsize
        + bt.size * jnp.dtype(bt.dtype).itemsize
        + B * (A + T) * jnp.dtype(out_dtype).itemsize
    )

    a_out, t_out = pl.pallas_call(
        _decoder_kernel,
        out_shape=(
            jax.ShapeDtypeStruct((B, A), out_dtype),
            jax.ShapeDtypeStruct((B, T), out_dtype),
        ),
        grid=grid,
        in_specs=[
            pl.BlockSpec((block_b, E), lambda i: (i, 0)),                # batch-tiled acts
            pl.BlockSpec((E, A), lambda i: (0, 0), pipeline_mode=single_buf),
            pl.BlockSpec((1, A), lambda i: (0, 0), pipeline_mode=single_buf),
            pl.BlockSpec((E, T), lambda i: (0, 0), pipeline_mode=single_buf),
            pl.BlockSpec((1, T), lambda i: (0, 0), pipeline_mode=single_buf),
        ],
        out_specs=(
            pl.BlockSpec((block_b, A), lambda i: (i, 0)),
            pl.BlockSpec((block_b, T), lambda i: (i, 0)),
        ),
        compiler_params=pltpu.CompilerParams(
            dimension_semantics=("parallel",),
            vmem_limit_bytes=_vmem_limit_bytes(
                block_b, E, A, T, h_d.dtype, wa.dtype, out_dtype),
        ),
        cost_estimate=pl.CostEstimate(
            flops=flops, transcendentals=0, bytes_accessed=bytes_accessed),
    )(h_d, wa, ba2, wt, bt2)
    return a_out, t_out


def init_decoder_params(key, encoding_dim, n_acts, n_targets, dtype=jnp.float32):
    """Deterministic init mimicking PyTorch nn.Linear default (U[-1/sqrt(in), 1/sqrt(in)])."""
    k1, k2, k3, k4 = jax.random.split(key, 4)
    bound = 1.0 / (encoding_dim ** 0.5)
    wa = jax.random.uniform(k1, (encoding_dim, n_acts), dtype, -bound, bound)
    ba = jax.random.uniform(k2, (n_acts,), dtype, -bound, bound)
    wt = jax.random.uniform(k3, (encoding_dim, n_targets), dtype, -bound, bound)
    bt = jax.random.uniform(k4, (n_targets,), dtype, -bound, bound)
    return wa, ba, wt, bt


if __name__ == "__main__":
    key = jax.random.PRNGKey(0)
    k_in, k_par, k_in2 = jax.random.split(key, 3)

    encoding_dim, n_acts, n_targets = 32, 16, 16
    wa, ba, wt, bt = init_decoder_params(k_par, encoding_dim, n_acts, n_targets)

    def reference(h):
        return h @ wa + ba, h @ wt + bt

    # Small, module-implied shape (forced through the Pallas path).
    h_small = jax.random.normal(k_in, (8, encoding_dim), jnp.float32)
    a_small, t_small = decoder_forward(h_small, wa, ba, wt, bt, use_pallas=True)
    jax.block_until_ready((a_small, t_small))
    a_ref, t_ref = reference(h_small)
    assert a_small.shape == (8, n_acts) and t_small.shape == (8, n_targets)
    assert jnp.allclose(a_small, a_ref, atol=1e-5, rtol=1e-5)
    assert jnp.allclose(t_small, t_ref, atol=1e-5, rtol=1e-5)

    # Ragged, multi-block batch: exercises >=2-block grid + masked last block.
    h_big = jax.random.normal(k_in2, (50, encoding_dim), jnp.float32)
    a_big, t_big = decoder_forward(h_big, wa, ba, wt, bt, use_pallas=True)
    jax.block_until_ready((a_big, t_big))
    a_ref2, t_ref2 = reference(h_big)
    assert a_big.shape == (50, n_acts) and t_big.shape == (50, n_targets)
    assert jnp.allclose(a_big, a_ref2, atol=1e-5, rtol=1e-5)
    assert jnp.allclose(t_big, t_ref2, atol=1e-5, rtol=1e-5)

    print("KERNEL_OK")
</pallas_src>

<mosaic_0001>
module attributes {stable_mosaic.version = 11 : i64} {
  func.func @_decoder_kernel(%arg0: i32, %arg1: memref<8x32xf32, #tpu.memory_space<vmem>>, %arg2: memref<32x16xf32, #tpu.memory_space<vmem>>, %arg3: memref<1x16xf32, #tpu.memory_space<vmem>>, %arg4: memref<32x16xf32, #tpu.memory_space<vmem>>, %arg5: memref<1x16xf32, #tpu.memory_space<vmem>>, %arg6: memref<8x16xf32, #tpu.memory_space<vmem>>, %arg7: memref<8x16xf32, #tpu.memory_space<vmem>>) attributes {dimension_semantics = [#tpu.dimension_semantics<parallel>], iteration_bounds = array<i64: 1>, scalar_prefetch = 0 : i64, scratch_operands = 0 : i64, tpu.core_type = #tpu.core_type<tc>, window_params = [{transform_indices = @transform_0, window_bounds = array<i64: 8, 32>}, {pipeline_mode = #tpu.pipeline_mode<synchronous>, transform_indices = @transform_1, window_bounds = array<i64: 32, 16>}, {pipeline_mode = #tpu.pipeline_mode<synchronous>, transform_indices = @transform_2, window_bounds = array<i64: 1, 16>}, {pipeline_mode = #tpu.pipeline_mode<synchronous>, transform_indices = @transform_3, window_bounds = array<i64: 32, 16>}, {pipeline_mode = #tpu.pipeline_mode<synchronous>, transform_indices = @transform_4, window_bounds = array<i64: 1, 16>}, {transform_indices = @transform_5, window_bounds = array<i64: 8, 16>}, {transform_indices = @transform_6, window_bounds = array<i64: 8, 16>}]} {
    %c0 = arith.constant 0 : index
    %c0_0 = arith.constant 0 : index
    %0 = vector.load %arg1[%c0, %c0_0] : memref<8x32xf32, #tpu.memory_space<vmem>>, vector<8x32xf32>
    %c0_1 = arith.constant 0 : index
    %c0_2 = arith.constant 0 : index
    %1 = vector.load %arg2[%c0_1, %c0_2] : memref<32x16xf32, #tpu.memory_space<vmem>>, vector<32x16xf32>
    %cst = arith.constant dense<0.000000e+00> : vector<8x16xf32>
    %2 = tpu.matmul %0, %1, %cst {dimension_numbers = #tpu.dot_dimension_numbers<[1], [0], [0], [1], [0, 0, 1, 1], [], []>} : vector<8x32xf32>, vector<32x16xf32>, vector<8x16xf32> -> vector<8x16xf32>
    %c0_3 = arith.constant 0 : index
    %c0_4 = arith.constant 0 : index
    %3 = vector.load %arg3[%c0_3, %c0_4] : memref<1x16xf32, #tpu.memory_space<vmem>>, vector<1x16xf32>
    %4 = vector.broadcast %3 : vector<1x16xf32> to vector<8x16xf32>
    %5 = arith.addf %2, %4 : vector<8x16xf32>
    %c0_5 = arith.constant 0 : index
    %c0_6 = arith.constant 0 : index
    %6 = vector.load %arg6[%c0_5, %c0_6] : memref<8x16xf32, #tpu.memory_space<vmem>>, vector<8x16xf32>
    tpu.vector_store %arg6[%c0_5, %c0_6], %5 {strides = array<i32>} : memref<8x16xf32, #tpu.memory_space<vmem>>, vector<8x16xf32>,
    %c0_7 = arith.constant 0 : index
    %c0_8 = arith.constant 0 : index
    %7 = vector.load %arg4[%c0_7, %c0_8] : memref<32x16xf32, #tpu.memory_space<vmem>>, vector<32x16xf32>
    %cst_9 = arith.constant dense<0.000000e+00> : vector<8x16xf32>
    %8 = tpu.matmul %0, %7, %cst_9 {dimension_numbers = #tpu.dot_dimension_numbers<[1], [0], [0], [1], [0, 0, 1, 1], [], []>} : vector<8x32xf32>, vector<32x16xf32>, vector<8x16xf32> -> vector<8x16xf32>
    %c0_10 = arith.constant 0 : index
    %c0_11 = arith.constant 0 : index
    %9 = vector.load %arg5[%c0_10, %c0_11] : memref<1x16xf32, #tpu.memory_space<vmem>>, vector<1x16xf32>
    %10 = vector.broadcast %9 : vector<1x16xf32> to vector<8x16xf32>
    %11 = arith.addf %8, %10 : vector<8x16xf32>
    %c0_12 = arith.constant 0 : index
    %c0_13 = arith.constant 0 : index
    %12 = vector.load %arg7[%c0_12, %c0_13] : memref<8x16xf32, #tpu.memory_space<vmem>>, vector<8x16xf32>
    tpu.vector_store %arg7[%c0_12, %c0_13], %11 {strides = array<i32>} : memref<8x16xf32, #tpu.memory_space<vmem>>, vector<8x16xf32>,
    return
  }
  func.func @transform_0(%arg0: i32) -> (i32, i32) {
    %c0_i32 = arith.constant 0 : i32
    %c0_i32_0 = arith.constant 0 : i32
    return %arg0, %c0_i32 : i32, i32
  }
  func.func @transform_1(%arg0: i32) -> (i32, i32) {
    %c0_i32 = arith.constant 0 : i32
    %c0_i32_0 = arith.constant 0 : i32
    %c0_i32_1 = arith.constant 0 : i32
    return %c0_i32, %c0_i32_0 : i32, i32
  }
  func.func @transform_2(%arg0: i32) -> (i32, i32) {
    %c0_i32 = arith.constant 0 : i32
    %c0_i32_0 = arith.constant 0 : i32
    %c0_i32_1 = arith.constant 0 : i32
    return %c0_i32, %c0_i32_0 : i32, i32
  }
  func.func @transform_3(%arg0: i32) -> (i32, i32) {
    %c0_i32 = arith.constant 0 : i32
    %c0_i32_0 = arith.constant 0 : i32
    %c0_i32_1 = arith.constant 0 : i32
    return %c0_i32, %c0_i32_0 : i32, i32
  }
  func.func @transform_4(%arg0: i32) -> (i32, i32) {
    %c0_i32 = arith.constant 0 : i32
    %c0_i32_0 = arith.constant 0 : i32
    %c0_i32_1 = arith.constant 0 : i32
    return %c0_i32, %c0_i32_0 : i32, i32
  }
  func.func @transform_5(%arg0: i32) -> (i32, i32) {
    %c0_i32 = arith.constant 0 : i32
    %c0_i32_0 = arith.constant 0 : i32
    return %arg0, %c0_i32 : i32, i32
  }
  func.func @transform_6(%arg0: i32) -> (i32, i32) {
    %c0_i32 = arith.constant 0 : i32
    %c0_i32_0 = arith.constant 0 : i32
    return %arg0, %c0_i32 : i32, i32
  }
}

</mosaic_0001>

<bundles_post_ra>
// kernel: tpu_custom_call.1
= control target key start
LH: loop header
LB: loop body
LE: loop exit
PB: predicated region body
PF: predicated region fallthrough
CT: control target
= control target key end

     0   :  { %12 = vsyncpa [#allocation3], 0  ;;  %v323_v3 = vmov 0.0|0.0   ;;  %vm324_vm0 = vmmov 0   ;;  %v325_v11 = vmov 0.0   ;;  %s422_s0 = inlined_call_operand.vmem [shape: f32[8,32], index: 0, kind: input, shape index: {}]   ;;  %s423_s1 = inlined_call_operand.vmem [shape: f32[32,16], index: 1, kind: input, shape index: {}]   ;;  %s424_s2 = inlined_call_operand.vmem [shape: f32[1,16], index: 2, kind: input, shape index: {}]   ;;  %s425_s3 = inlined_call_operand.vmem [shape: f32[32,16], index: 3, kind: input, shape index: {}]   ;;  %s426_s4 = inlined_call_operand.vmem [shape: f32[1,16], index: 4, kind: input, shape index: {}]   ;;  %s427_s5 = inlined_call_operand.hbm [shape: f32[8,16], index: 5, kind: output, shape index: {0}]   ;;  %s428_s6 = inlined_call_operand.hbm [shape: f32[8,16], index: 6, kind: output, shape index: {1}]  }
   0x1   :  { %v25_v0 = vld [vmem:[%s423_s1] sm:$0xff]  ;;  %v26_v1 = vld [vmem:[%s423_s1 + $0x8] sm:$0xff]  ;;  %258 = vmatprep.subr.bf16.mxu0 %v323_v3  ;;  %264 = vmatprep.subr.bf16.mxu1 %v323_v3  ;;  %v27_v6 = vld [vmem:[%s423_s1 + $0x10] sm:$0xff] }
   0x2   :  { %v112_v2 = vld [vmem:[%s425_s3] sm:$0xff]  ;;  %v259_v4 = vpack.c.bf16 %v26_v1, %v25_v0  ;;  %v113_v5 = vld [vmem:[%s425_s3 + $0x8] sm:$0xff]  ;;  %v28_v7 = vld [vmem:[%s423_s1 + $0x18] sm:$0xff]  ;;  %244 = vmatprep.mubr.msk.f32.mxu0 %vm324_vm0, %v325_v11  ;;  %255 = vmatprep.mubr.msk.f32.mxu1 %vm324_vm0, %v325_v11 }
   0x3   :  { %v265_v8 = vpack.c.bf16 %v113_v5, %v112_v2  ;;  %v114_v9 = vld [vmem:[%s425_s3 + $0x10] sm:$0xff]  ;;  %v115_v10 = vld [vmem:[%s425_s3 + $0x18] sm:$0xff]  ;;  %v262_v12 = vpack.c.bf16 %v28_v7, %v27_v6 }
   0x4   :  { %260 = vmatpush3.bf16.msra.mxu0 %v259_v4 }
   0x5   :  { %13 = vsyncpa [#allocation5], 0  ;;  %266 = vmatpush3.bf16.msra.mxu1 %v265_v8  ;;  %261 = vmatprep.subr.bf16.mxu0 %v323_v3  ;;  %v268_v13 = vpack.c.bf16 %v115_v10, %v114_v9  ;;  %v24_v14 = vld [vmem:[%s422_s0] sm:$0xff]  ;;  %vm36_vm1 = vcmask 261120   ;;  %s326_s15 = smov [#allocation2]   ;;  %s327_s19 = smov [#allocation4]  }
   0x6   :  { %267 = vmatprep.subr.bf16.mxu1 %v323_v3  ;;  %v222_v15 = vld [vmem:[%s424_s2] ss:$0 sm:$0xff]  ;;  %s200_s16 = sshll.u32 %s326_s15, 4  ;;  %s210_s20 = sshll.u32 %s327_s19, 4  ;;  %vm110_vm2 = vcmask 130048   ;;  %s201_s16 = int_to_ptr.vmem [resolvable:$true] %s200_s16  ;;  %s211_s20 = int_to_ptr.vmem [resolvable:$true] %s210_s20 }
   0x7   :  { %v224_v16 = vld [vmem:[%s426_s4] ss:$0 sm:$0xff]  ;;  %s275_s0 = scalar_lea.vmem %s201_s16, 128  ;;  %p280_p1 = scmp.lt.s32.totalorder %s201_s16, %s201_s16 }
   0x8   :  { %263 = vmatpush3.bf16.msra.mxu0 %v262_v12  ;;  %p276_p0 = scmp.ne.s32.totalorder %s201_s16, %s275_s0  ;;  %p281_p2 = scmp.lt.s32.totalorder %s275_s0, %s275_s0 }
   0x9   :  { %269 = vmatpush3.bf16.msra.mxu1 %v268_v13 }
   0xa   :  { %p282_p3 = por %p281_p2, %p280_p1 }
   0xb   :  { %245 = vmatmul.mubr.msk.f32.vlgmr.msra.gmra.mrb[0].mxu0 %vm36_vm1, %v24_v14 }
   0xc   :  { %256 = vmatmul.mubr.msk.f32.vlgmr.msra.gmra.mrb[0].mxu1 %vm36_vm1, %v24_v14  ;;  %p283_p4 = pnand %p282_p3, %p276_p0 }
  0xde   :  { %v106_v17 = vpop.f32.mrb[0].mxu0 }
  0xdf   :  { %v107_v18 = vadd.f32 %v222_v15, %v106_v17  ;;  %v189_v19 = vpop.f32.mrb[0].mxu1  ;;  %v246_v20 = vpop.f32.mrb[1].mxu0 }
  0xe0   :  { %v190_v21 = vadd.f32 %v224_v16, %v189_v19  ;;  %v257_v22 = vpop.f32.mrb[1].mxu1 }
  0xe1   :  { %111 = vst.msk [vmem:[#allocation2] sm:$0xff] %vm110_vm2, %v107_v18 }
  0xe2   :  { %286 = shalt.err (!%p283_p4)
}
  0xe3   :  { %s287_s21 = scalar_lea.hbm %s427_s5, 128 }
  0xe4   :  { %p288_p5 = scmp.ne.s32.totalorder %s427_s5, %s287_s21  ;;  %p291_p6 = scmp.lt.u32.totalorder %s287_s21, %s427_s5 }
  0xe6   :  { %p293_p7 = pnand %p291_p6, %p288_p5 }
  0xe8   :  { %296 = shalt.err (!%p293_p7)
}
  0xe9   :  { %203 = dma.vmem_to_hbm [thread:$0]  %s201_s16, 128, %s427_s5, [#allocation3]   ;;  %193 = vst.msk [vmem:[#allocation4] sm:$0xff] %vm110_vm2, %v190_v21 }
  0xea   :  { %s297_s28 = scalar_lea.vmem %s211_s20, 128  ;;  %p302_p9 = scmp.lt.s32.totalorder %s211_s20, %s211_s20 }
  0xeb   :  { %p298_p8 = scmp.ne.s32.totalorder %s211_s20, %s297_s28  ;;  %p303_p10 = scmp.lt.s32.totalorder %s297_s28, %s297_s28 }
  0xed   :  { %p304_p11 = por %p303_p10, %p302_p9 }
  0xef   :  { %p305_p12 = pnand %p304_p11, %p298_p8 }
  0xf1   :  { %308 = shalt.err (!%p305_p12)
}
  0xf2   :  { %s309_s7 = scalar_lea.hbm %s428_s6, 128 }
  0xf3   :  { %p310_p13 = scmp.ne.s32.totalorder %s428_s6, %s309_s7  ;;  %p313_p0 = scmp.lt.u32.totalorder %s309_s7, %s428_s6 }
  0xf5   :  { %p315_p1 = pnand %p313_p0, %p310_p13 }
  0xf7   :  { %318 = shalt.err (!%p315_p1)
}
  0xf8   :  { %213 = dma.vmem_to_hbm [thread:$0]  %s211_s20, 128, %s428_s6, [#allocation5]  }
  0xf9   :  { %319 = dma.done.wait [#allocation3], 128  }
  0xfa   :  { %320 = vsyncadd [#allocation3], 4294967168 }
  0xfb   :  { %321 = dma.done.wait [#allocation5], 128  }
  0xfc   :  { %322 = vsyncadd [#allocation5], 4294967168 }
  0xfd   :  { %220 = vsyncpa [#allocation3], 1 }
  0xfe   :  { %221 = vsyncpa [#allocation5], 1 }

</bundles_post_ra>
